<compile_context>
chip_gen: v5e
topology: v5e:2x2
jax: 0.10.0
libtpu: 0.0.40
codegen_flags: <defaults>
</compile_context>

<pallas_src>
import jax
import jax.numpy as jnp
from jax.experimental import pallas as pl
from jax.experimental.pallas import tpu as pltpu

# ----------------------------- configuration -------------------------------
BATCH = 8
INPUT_DIM = 32
HIDDEN_DIMS = [128, 64]
NUM_HEADS = 3
LN_EPS = 1e-5

H1, H2 = HIDDEN_DIMS


# ------------------------------- kernel ------------------------------------
def _ln_relu(h, gamma, beta, eps=LN_EPS):
    """Single-pass LayerNorm (biased variance, affine) followed by ReLU.

    Sum / sum-of-squares keep the two cross-lane (XLU) reductions independent.
    Variance is clamped at 0 to guard against catastrophic cancellation before
    rsqrt (matches PyTorch two-pass LayerNorm numerics within tolerance).
    """
    inv_n = 1.0 / h.shape[-1]
    s = jnp.sum(h, axis=-1, keepdims=True)
    ss = jnp.sum(h * h, axis=-1, keepdims=True)
    mean = s * inv_n
    var = jnp.maximum(ss * inv_n - mean * mean, 0.0)
    return jnp.maximum((h - mean) * jax.lax.rsqrt(var + eps) * gamma + beta, 0.0)


def ensemble_mlp_kernel(
    x_ref,    # (B, D_in)
    p1_ref,   # (D_in + 3, NUM_HEADS*H1): [W1 (head-major) ; b1 ; gamma1 ; beta1]
    p2_ref,   # (H1 + 3, NUM_HEADS*H2):   [W2 (head-major) ; b2 ; gamma2 ; beta2]
    p3_ref,   # (NUM_HEADS + 1, H2): rows 0..K-1 = hw_k*W3_k ; row K = [sum_k hw_k*b3_k, 0...]
    out_ref,  # (B, 1): ensemble prediction (already softmax-weighted + biased)
):
    x = x_ref[...]
    p1 = p1_ref[...]
    p2 = p2_ref[...]
    p3 = p3_ref[...]

    # ---- layer 1, fused across heads: one MXU matmul with N = NUM_HEADS*H1 ----
    h1_all = jnp.dot(x, p1[0:INPUT_DIM, :], preferred_element_type=jnp.float32)
    h1_all = h1_all + p1[INPUT_DIM:INPUT_DIM + 1, :]
    g1_all = p1[INPUT_DIM + 1:INPUT_DIM + 2, :]
    be1_all = p1[INPUT_DIM + 2:INPUT_DIM + 3, :]

    # ---- per-head layer 2 + weighted accumulation of the output layer ----
    acc = jnp.zeros((x.shape[0], H2), jnp.float32)
    for k in range(NUM_HEADS):            # static unroll: 3 independent chains
        lo1, hi1 = k * H1, (k + 1) * H1   # 128-lane aligned slices
        h1 = _ln_relu(h1_all[:, lo1:hi1], g1_all[:, lo1:hi1], be1_all[:, lo1:hi1])

        lo2, hi2 = k * H2, (k + 1) * H2
        h2 = jnp.dot(h1, p2[0:H1, lo2:hi2], preferred_element_type=jnp.float32)
        h2 = h2 + p2[H1:H1 + 1, lo2:hi2]
        h2 = _ln_relu(h2, p2[H1 + 1:H1 + 2, lo2:hi2], p2[H1 + 2:H1 + 3, lo2:hi2])

        # softmax(head_weights) is folded into W3 -> just accumulate.
        acc = acc + h2 * p3[k:k + 1, :]

    # Single cross-lane reduction + folded scalar bias (sum_k hw_k * b3_k).
    pred = jnp.sum(acc, axis=-1, keepdims=True) + p3[NUM_HEADS:NUM_HEADS + 1, 0:1]
    out_ref[...] = pred


# ------------------------------- wrapper ------------------------------------
def pack_params(params):
    """One-time parameter packing (would be cached in a real deployment)."""
    (w1, b1, g1, be1, w2, b2, g2, be2, w3, b3, head_weights) = params
    H, d_in, h1 = w1.shape
    h2 = w2.shape[2]
    hw = jax.nn.softmax(head_weights).astype(jnp.float32)             # (H,)

    # Layer-1 slab: rows [0:D_in] = W1 head-major along lanes, then bias/gamma/beta.
    w1cat = jnp.transpose(w1, (1, 0, 2)).reshape(d_in, H * h1)
    p1 = jnp.concatenate(
        [w1cat,
         b1.reshape(1, H * h1),
         g1.reshape(1, H * h1),
         be1.reshape(1, H * h1)], axis=0)                             # (D_in+3, H*h1)

    # Layer-2 slab, lane-dense: rows [0:H1] = W2 head-major along lanes, then
    # bias/gamma/beta rows.  Minor dim = H*h2 = 192 (no 64->128 lane padding).
    w2cat = jnp.transpose(w2, (1, 0, 2)).reshape(h1, H * h2)
    p2 = jnp.concatenate(
        [w2cat,
         b2.reshape(1, H * h2),
         g2.reshape(1, H * h2),
         be2.reshape(1, H * h2)], axis=0)                             # (H1+3, H*h2)

    # Layer-3 slab with softmax(head_weights) folded into W3, plus one extra row
    # carrying the folded scalar bias sum_k hw_k * b3_k at lane 0.
    w3s = w3[:, :, 0] * hw[:, None]                                   # (H, H2)
    b3sum = jnp.sum(b3[:, 0, 0] * hw)                                 # scalar
    bias_row = jnp.zeros((1, h2), jnp.float32).at[0, 0].set(b3sum)
    p3 = jnp.concatenate([w3s, bias_row], axis=0)                     # (H+1, H2)
    return p1, p2, p3


@jax.jit
def ensemble_mlp_forward(x, packed):
    """x: (B, D_in) float32 -> (B,) float32."""
    p1, p2, p3 = packed
    B = x.shape[0]
    vmem = pl.BlockSpec(memory_space=pltpu.MemorySpace.VMEM)

    flops = 2 * B * (INPUT_DIM * NUM_HEADS * H1    # layer 1 (fused)
                     + NUM_HEADS * H1 * H2         # layer 2 (per head)
                     + NUM_HEADS * H2)             # output accumulation
    transcendentals = 2 * B * NUM_HEADS            # one rsqrt per LayerNorm row
    bytes_accessed = 4 * (x.size + p1.size + p2.size + p3.size + B)

    pred = pl.pallas_call(
        ensemble_mlp_kernel,
        out_shape=jax.ShapeDtypeStruct((B, 1), jnp.float32),
        in_specs=[vmem] * 4,
        out_specs=vmem,
        cost_estimate=pl.CostEstimate(
            flops=flops,
            transcendentals=transcendentals,
            bytes_accessed=bytes_accessed),
    )(x, p1, p2, p3)
    # Aggregation + softmax weighting + bias already done in-kernel.
    return pred[:, 0]


# ---------------------------- init & reference ------------------------------
def init_params(key, input_dim, hidden_dims, num_heads):
    """Deterministic parameter init (shapes match the PyTorch module)."""
    h1, h2 = hidden_dims
    ks = jax.random.split(key, 8)

    def u(k, shape, fan_in):
        bound = 1.0 / jnp.sqrt(fan_in)
        return jax.random.uniform(k, shape, jnp.float32, -bound, bound)

    w1 = u(ks[0], (num_heads, input_dim, h1), input_dim)
    b1 = u(ks[1], (num_heads, 1, h1), input_dim)
    g1 = jnp.ones((num_heads, 1, h1), jnp.float32)
    be1 = jnp.zeros((num_heads, 1, h1), jnp.float32)

    w2 = u(ks[2], (num_heads, h1, h2), h1)
    b2 = u(ks[3], (num_heads, 1, h2), h1)
    g2 = jnp.ones((num_heads, 1, h2), jnp.float32)
    be2 = jnp.zeros((num_heads, 1, h2), jnp.float32)

    w3 = u(ks[4], (num_heads, h2, 1), h2)
    b3 = u(ks[5], (num_heads, 1, 1), h2)

    head_weights = jnp.ones((num_heads,), jnp.float32)   # torch.ones(num_heads)
    return (w1, b1, g1, be1, w2, b2, g2, be2, w3, b3, head_weights)


def _layernorm_ref(h, gamma, beta, eps=LN_EPS):
    mean = jnp.mean(h, axis=-1, keepdims=True)
    var = jnp.mean((h - mean) ** 2, axis=-1, keepdims=True)
    return (h - mean) / jnp.sqrt(var + eps) * gamma + beta


def reference_forward(x, params):
    """Plain-JAX reference mirroring the PyTorch forward (inference mode)."""
    (w1, b1, g1, be1, w2, b2, g2, be2, w3, b3, head_weights) = params
    preds = []
    for k in range(w1.shape[0]):
        h = x @ w1[k] + b1[k]
        h = jnp.maximum(_layernorm_ref(h, g1[k], be1[k]), 0.0)
        h = h @ w2[k] + b2[k]
        h = jnp.maximum(_layernorm_ref(h, g2[k], be2[k]), 0.0)
        preds.append((h @ w3[k] + b3[k])[:, 0])
    preds = jnp.stack(preds, axis=1)                     # (B, num_heads)
    w = jax.nn.softmax(head_weights)
    return (preds * w[None, :]).sum(axis=1)


# --------------------------------- main -------------------------------------
if __name__ == "__main__":
    key = jax.random.PRNGKey(0)
    kx, kp = jax.random.split(key)

    x = jax.random.normal(kx, (BATCH, INPUT_DIM), jnp.float32)
    params = init_params(kp, INPUT_DIM, HIDDEN_DIMS, NUM_HEADS)
    packed = pack_params(params)

    out = ensemble_mlp_forward(x, packed)
    out = jax.block_until_ready(out)

    ref = reference_forward(x, params)
    assert out.shape == (BATCH,)
    assert jnp.allclose(out, ref, atol=1e-4, rtol=1e-4), (out, ref)

    print("KERNEL_OK")
</pallas_src>

<mosaic_0001>
module attributes {stable_mosaic.version = 11 : i64} {
  func.func @ensemble_mlp_kernel(%arg0: memref<8x32xf32, #tpu.memory_space<vmem>>, %arg1: memref<35x384xf32, #tpu.memory_space<vmem>>, %arg2: memref<131x192xf32, #tpu.memory_space<vmem>>, %arg3: memref<4x64xf32, #tpu.memory_space<vmem>>, %arg4: memref<8x1xf32, #tpu.memory_space<vmem>>) attributes {dimension_semantics = [], scalar_prefetch = 0 : i64, scratch_operands = 0 : i64, tpu.core_type = #tpu.core_type<tc>} {
    %c0 = arith.constant 0 : index
    %c0_0 = arith.constant 0 : index
    %0 = vector.load %arg0[%c0, %c0_0] : memref<8x32xf32, #tpu.memory_space<vmem>>, vector<8x32xf32>
    %c0_1 = arith.constant 0 : index
    %c0_2 = arith.constant 0 : index
    %1 = vector.load %arg1[%c0_1, %c0_2] : memref<35x384xf32, #tpu.memory_space<vmem>>, vector<35x384xf32>
    %c0_3 = arith.constant 0 : index
    %c0_4 = arith.constant 0 : index
    %2 = vector.load %arg2[%c0_3, %c0_4] : memref<131x192xf32, #tpu.memory_space<vmem>>, vector<131x192xf32>
    %c0_5 = arith.constant 0 : index
    %c0_6 = arith.constant 0 : index
    %3 = vector.load %arg3[%c0_5, %c0_6] : memref<4x64xf32, #tpu.memory_space<vmem>>, vector<4x64xf32>
    %4 = vector.extract_strided_slice %1 {offsets = [0, 0], sizes = [32, 384], strides = [1, 1]} : vector<35x384xf32> to vector<32x384xf32>
    %cst = arith.constant dense<0.000000e+00> : vector<8x384xf32>
    %5 = tpu.matmul %0, %4, %cst {dimension_numbers = #tpu.dot_dimension_numbers<[1], [0], [0], [1], [0, 0, 1, 1], [], []>} : vector<8x32xf32>, vector<32x384xf32>, vector<8x384xf32> -> vector<8x384xf32>
    %6 = vector.extract_strided_slice %1 {offsets = [32, 0], sizes = [1, 384], strides = [1, 1]} : vector<35x384xf32> to vector<1x384xf32>
    %7 = vector.broadcast %6 : vector<1x384xf32> to vector<8x384xf32>
    %8 = arith.addf %5, %7 : vector<8x384xf32>
    %9 = vector.extract_strided_slice %1 {offsets = [33, 0], sizes = [1, 384], strides = [1, 1]} : vector<35x384xf32> to vector<1x384xf32>
    %10 = vector.extract_strided_slice %1 {offsets = [34, 0], sizes = [1, 384], strides = [1, 1]} : vector<35x384xf32> to vector<1x384xf32>
    %cst_7 = arith.constant 0.000000e+00 : f32
    %11 = vector.broadcast %cst_7 : f32 to vector<8x64xf32>
    %12 = vector.extract_strided_slice %8 {offsets = [0, 0], sizes = [8, 128], strides = [1, 1]} : vector<8x384xf32> to vector<8x128xf32>
    %13 = vector.extract_strided_slice %9 {offsets = [0, 0], sizes = [1, 128], strides = [1, 1]} : vector<1x384xf32> to vector<1x128xf32>
    %14 = vector.extract_strided_slice %10 {offsets = [0, 0], sizes = [1, 128], strides = [1, 1]} : vector<1x384xf32> to vector<1x128xf32>
    %cst_8 = arith.constant dense<0.000000e+00> : vector<8xf32>
    %15 = vector.multi_reduction <add>, %12, %cst_8 [1] : vector<8x128xf32> to vector<8xf32>
    %16 = vector.shape_cast %15 : vector<8xf32> to vector<8x1xf32>
    %17 = arith.mulf %12, %12 : vector<8x128xf32>
    %cst_9 = arith.constant dense<0.000000e+00> : vector<8xf32>
    %18 = vector.multi_reduction <add>, %17, %cst_9 [1] : vector<8x128xf32> to vector<8xf32>
    %19 = vector.shape_cast %18 : vector<8xf32> to vector<8x1xf32>
    %cst_10 = arith.constant 7.812500e-03 : f32
    %20 = vector.broadcast %cst_10 : f32 to vector<8x1xf32>
    %21 = arith.mulf %16, %20 : vector<8x1xf32>
    %cst_11 = arith.constant 7.812500e-03 : f32
    %22 = vector.broadcast %cst_11 : f32 to vector<8x1xf32>
    %23 = arith.mulf %19, %22 : vector<8x1xf32>
    %24 = arith.mulf %21, %21 : vector<8x1xf32>
    %25 = arith.subf %23, %24 : vector<8x1xf32>
    %cst_12 = arith.constant 0.000000e+00 : f32
    %26 = vector.broadcast %cst_12 : f32 to vector<8x1xf32>
    %27 = arith.maximumf %25, %26 : vector<8x1xf32>
    %28 = vector.broadcast %21 : vector<8x1xf32> to vector<8x128xf32>
    %29 = arith.subf %12, %28 : vector<8x128xf32>
    %cst_13 = arith.constant 9.99999974E-6 : f32
    %30 = vector.broadcast %cst_13 : f32 to vector<8x1xf32>
    %31 = arith.addf %27, %30 : vector<8x1xf32>
    %32 = math.rsqrt %31 : vector<8x1xf32>
    %33 = vector.broadcast %32 : vector<8x1xf32> to vector<8x128xf32>
    %34 = arith.mulf %29, %33 : vector<8x128xf32>
    %35 = vector.broadcast %13 : vector<1x128xf32> to vector<8x128xf32>
    %36 = arith.mulf %34, %35 : vector<8x128xf32>
    %37 = vector.broadcast %14 : vector<1x128xf32> to vector<8x128xf32>
    %38 = arith.addf %36, %37 : vector<8x128xf32>
    %cst_14 = arith.constant 0.000000e+00 : f32
    %39 = vector.broadcast %cst_14 : f32 to vector<8x128xf32>
    %40 = arith.maximumf %38, %39 : vector<8x128xf32>
    %41 = vector.extract_strided_slice %2 {offsets = [0, 0], sizes = [128, 64], strides = [1, 1]} : vector<131x192xf32> to vector<128x64xf32>
    %cst_15 = arith.constant dense<0.000000e+00> : vector<8x64xf32>
    %42 = tpu.matmul %40, %41, %cst_15 {dimension_numbers = #tpu.dot_dimension_numbers<[1], [0], [0], [1], [0, 0, 1, 1], [], []>} : vector<8x128xf32>, vector<128x64xf32>, vector<8x64xf32> -> vector<8x64xf32>
    %43 = vector.extract_strided_slice %2 {offsets = [128, 0], sizes = [1, 64], strides = [1, 1]} : vector<131x192xf32> to vector<1x64xf32>
    %44 = vector.broadcast %43 : vector<1x64xf32> to vector<8x64xf32>
    %45 = arith.addf %42, %44 : vector<8x64xf32>
    %46 = vector.extract_strided_slice %2 {offsets = [129, 0], sizes = [1, 64], strides = [1, 1]} : vector<131x192xf32> to vector<1x64xf32>
    %47 = vector.extract_strided_slice %2 {offsets = [130, 0], sizes = [1, 64], strides = [1, 1]} : vector<131x192xf32> to vector<1x64xf32>
    %cst_16 = arith.constant dense<0.000000e+00> : vector<8xf32>
    %48 = vector.multi_reduction <add>, %45, %cst_16 [1] : vector<8x64xf32> to vector<8xf32>
    %49 = vector.shape_cast %48 : vector<8xf32> to vector<8x1xf32>
    %50 = arith.mulf %45, %45 : vector<8x64xf32>
    %cst_17 = arith.constant dense<0.000000e+00> : vector<8xf32>
    %51 = vector.multi_reduction <add>, %50, %cst_17 [1] : vector<8x64xf32> to vector<8xf32>
    %52 = vector.shape_cast %51 : vector<8xf32> to vector<8x1xf32>
    %cst_18 = arith.constant 1.562500e-02 : f32
    %53 = vector.broadcast %cst_18 : f32 to vector<8x1xf32>
    %54 = arith.mulf %49, %53 : vector<8x1xf32>
    %cst_19 = arith.constant 1.562500e-02 : f32
    %55 = vector.broadcast %cst_19 : f32 to vector<8x1xf32>
    %56 = arith.mulf %52, %55 : vector<8x1xf32>
    %57 = arith.mulf %54, %54 : vector<8x1xf32>
    %58 = arith.subf %56, %57 : vector<8x1xf32>
    %cst_20 = arith.constant 0.000000e+00 : f32
    %59 = vector.broadcast %cst_20 : f32 to vector<8x1xf32>
    %60 = arith.maximumf %58, %59 : vector<8x1xf32>
    %61 = vector.broadcast %54 : vector<8x1xf32> to vector<8x64xf32>
    %62 = arith.subf %45, %61 : vector<8x64xf32>
    %cst_21 = arith.constant 9.99999974E-6 : f32
    %63 = vector.broadcast %cst_21 : f32 to vector<8x1xf32>
    %64 = arith.addf %60, %63 : vector<8x1xf32>
    %65 = math.rsqrt %64 : vector<8x1xf32>
    %66 = vector.broadcast %65 : vector<8x1xf32> to vector<8x64xf32>
    %67 = arith.mulf %62, %66 : vector<8x64xf32>
    %68 = vector.broadcast %46 : vector<1x64xf32> to vector<8x64xf32>
    %69 = arith.mulf %67, %68 : vector<8x64xf32>
    %70 = vector.broadcast %47 : vector<1x64xf32> to vector<8x64xf32>
    %71 = arith.addf %69, %70 : vector<8x64xf32>
    %cst_22 = arith.constant 0.000000e+00 : f32
    %72 = vector.broadcast %cst_22 : f32 to vector<8x64xf32>
    %73 = arith.maximumf %71, %72 : vector<8x64xf32>
    %74 = vector.extract_strided_slice %3 {offsets = [0, 0], sizes = [1, 64], strides = [1, 1]} : vector<4x64xf32> to vector<1x64xf32>
    %75 = vector.broadcast %74 : vector<1x64xf32> to vector<8x64xf32>
    %76 = arith.mulf %73, %75 : vector<8x64xf32>
    %77 = arith.addf %11, %76 : vector<8x64xf32>
    %78 = vector.extract_strided_slice %8 {offsets = [0, 128], sizes = [8, 128], strides = [1, 1]} : vector<8x384xf32> to vector<8x128xf32>
    %79 = vector.extract_strided_slice %9 {offsets = [0, 128], sizes = [1, 128], strides = [1, 1]} : vector<1x384xf32> to vector<1x128xf32>
    %80 = vector.extract_strided_slice %10 {offsets = [0, 128], sizes = [1, 128], strides = [1, 1]} : vector<1x384xf32> to vector<1x128xf32>
    %cst_23 = arith.constant dense<0.000000e+00> : vector<8xf32>
    %81 = vector.multi_reduction <add>, %78, %cst_23 [1] : vector<8x128xf32> to vector<8xf32>
    %82 = vector.shape_cast %81 : vector<8xf32> to vector<8x1xf32>
    %83 = arith.mulf %78, %78 : vector<8x128xf32>
    %cst_24 = arith.constant dense<0.000000e+00> : vector<8xf32>
    %84 = vector.multi_reduction <add>, %83, %cst_24 [1] : vector<8x128xf32> to vector<8xf32>
    %85 = vector.shape_cast %84 : vector<8xf32> to vector<8x1xf32>
    %cst_25 = arith.constant 7.812500e-03 : f32
    %86 = vector.broadcast %cst_25 : f32 to vector<8x1xf32>
    %87 = arith.mulf %82, %86 : vector<8x1xf32>
    %cst_26 = arith.constant 7.812500e-03 : f32
    %88 = vector.broadcast %cst_26 : f32 to vector<8x1xf32>
    %89 = arith.mulf %85, %88 : vector<8x1xf32>
    %90 = arith.mulf %87, %87 : vector<8x1xf32>
    %91 = arith.subf %89, %90 : vector<8x1xf32>
    %cst_27 = arith.constant 0.000000e+00 : f32
    %92 = vector.broadcast %cst_27 : f32 to vector<8x1xf32>
    %93 = arith.maximumf %91, %92 : vector<8x1xf32>
    %94 = vector.broadcast %87 : vector<8x1xf32> to vector<8x128xf32>
    %95 = arith.subf %78, %94 : vector<8x128xf32>
    %cst_28 = arith.constant 9.99999974E-6 : f32
    %96 = vector.broadcast %cst_28 : f32 to vector<8x1xf32>
    %97 = arith.addf %93, %96 : vector<8x1xf32>
    %98 = math.rsqrt %97 : vector<8x1xf32>
    %99 = vector.broadcast %98 : vector<8x1xf32> to vector<8x128xf32>
    %100 = arith.mulf %95, %99 : vector<8x128xf32>
    %101 = vector.broadcast %79 : vector<1x128xf32> to vector<8x128xf32>
    %102 = arith.mulf %100, %101 : vector<8x128xf32>
    %103 = vector.broadcast %80 : vector<1x128xf32> to vector<8x128xf32>
    %104 = arith.addf %102, %103 : vector<8x128xf32>
    %cst_29 = arith.constant 0.000000e+00 : f32
    %105 = vector.broadcast %cst_29 : f32 to vector<8x128xf32>
    %106 = arith.maximumf %104, %105 : vector<8x128xf32>
    %107 = vector.extract_strided_slice %2 {offsets = [0, 64], sizes = [128, 64], strides = [1, 1]} : vector<131x192xf32> to vector<128x64xf32>
    %cst_30 = arith.constant dense<0.000000e+00> : vector<8x64xf32>
    %108 = tpu.matmul %106, %107, %cst_30 {dimension_numbers = #tpu.dot_dimension_numbers<[1], [0], [0], [1], [0, 0, 1, 1], [], []>} : vector<8x128xf32>, vector<128x64xf32>, vector<8x64xf32> -> vector<8x64xf32>
    %109 = vector.extract_strided_slice %2 {offsets = [128, 64], sizes = [1, 64], strides = [1, 1]} : vector<131x192xf32> to vector<1x64xf32>
    %110 = vector.broadcast %109 : vector<1x64xf32> to vector<8x64xf32>
    %111 = arith.addf %108, %110 : vector<8x64xf32>
    %112 = vector.extract_strided_slice %2 {offsets = [129, 64], sizes = [1, 64], strides = [1, 1]} : vector<131x192xf32> to vector<1x64xf32>
    %113 = vector.extract_strided_slice %2 {offsets = [130, 64], sizes = [1, 64], strides = [1, 1]} : vector<131x192xf32> to vector<1x64xf32>
    %cst_31 = arith.constant dense<0.000000e+00> : vector<8xf32>
    %114 = vector.multi_reduction <add>, %111, %cst_31 [1] : vector<8x64xf32> to vector<8xf32>
    %115 = vector.shape_cast %114 : vector<8xf32> to vector<8x1xf32>
    %116 = arith.mulf %111, %111 : vector<8x64xf32>
    %cst_32 = arith.constant dense<0.000000e+00> : vector<8xf32>
    %117 = vector.multi_reduction <add>, %116, %cst_32 [1] : vector<8x64xf32> to vector<8xf32>
    %118 = vector.shape_cast %117 : vector<8xf32> to vector<8x1xf32>
    %cst_33 = arith.constant 1.562500e-02 : f32
    %119 = vector.broadcast %cst_33 : f32 to vector<8x1xf32>
    %120 = arith.mulf %115, %119 : vector<8x1xf32>
    %cst_34 = arith.constant 1.562500e-02 : f32
    %121 = vector.broadcast %cst_34 : f32 to vector<8x1xf32>
    %122 = arith.mulf %118, %121 : vector<8x1xf32>
    %123 = arith.mulf %120, %120 : vector<8x1xf32>
    %124 = arith.subf %122, %123 : vector<8x1xf32>
    %cst_35 = arith.constant 0.000000e+00 : f32
    %125 = vector.broadcast %cst_35 : f32 to vector<8x1xf32>
    %126 = arith.maximumf %124, %125 : vector<8x1xf32>
    %127 = vector.broadcast %120 : vector<8x1xf32> to vector<8x64xf32>
    %128 = arith.subf %111, %127 : vector<8x64xf32>
    %cst_36 = arith.constant 9.99999974E-6 : f32
    %129 = vector.broadcast %cst_36 : f32 to vector<8x1xf32>
    %130 = arith.addf %126, %129 : vector<8x1xf32>
    %131 = math.rsqrt %130 : vector<8x1xf32>
    %132 = vector.broadcast %131 : vector<8x1xf32> to vector<8x64xf32>
    %133 = arith.mulf %128, %132 : vector<8x64xf32>
    %134 = vector.broadcast %112 : vector<1x64xf32> to vector<8x64xf32>
    %135 = arith.mulf %133, %134 : vector<8x64xf32>
    %136 = vector.broadcast %113 : vector<1x64xf32> to vector<8x64xf32>
    %137 = arith.addf %135, %136 : vector<8x64xf32>
    %cst_37 = arith.constant 0.000000e+00 : f32
    %138 = vector.broadcast %cst_37 : f32 to vector<8x64xf32>
    %139 = arith.maximumf %137, %138 : vector<8x64xf32>
    %140 = vector.extract_strided_slice %3 {offsets = [1, 0], sizes = [1, 64], strides = [1, 1]} : vector<4x64xf32> to vector<1x64xf32>
    %141 = vector.broadcast %140 : vector<1x64xf32> to vector<8x64xf32>
    %142 = arith.mulf %139, %141 : vector<8x64xf32>
    %143 = arith.addf %77, %142 : vector<8x64xf32>
    %144 = vector.extract_strided_slice %8 {offsets = [0, 256], sizes = [8, 128], strides = [1, 1]} : vector<8x384xf32> to vector<8x128xf32>
    %145 = vector.extract_strided_slice %9 {offsets = [0, 256], sizes = [1, 128], strides = [1, 1]} : vector<1x384xf32> to vector<1x128xf32>
    %146 = vector.extract_strided_slice %10 {offsets = [0, 256], sizes = [1, 128], strides = [1, 1]} : vector<1x384xf32> to vector<1x128xf32>
    %cst_38 = arith.constant dense<0.000000e+00> : vector<8xf32>
    %147 = vector.multi_reduction <add>, %144, %cst_38 [1] : vector<8x128xf32> to vector<8xf32>
    %148 = vector.shape_cast %147 : vector<8xf32> to vector<8x1xf32>
    %149 = arith.mulf %144, %144 : vector<8x128xf32>
    %cst_39 = arith.constant dense<0.000000e+00> : vector<8xf32>
    %150 = vector.multi_reduction <add>, %149, %cst_39 [1] : vector<8x128xf32> to vector<8xf32>
    %151 = vector.shape_cast %150 : vector<8xf32> to vector<8x1xf32>
    %cst_40 = arith.constant 7.812500e-03 : f32
    %152 = vector.broadcast %cst_40 : f32 to vector<8x1xf32>
    %153 = arith.mulf %148, %152 : vector<8x1xf32>
    %cst_41 = arith.constant 7.812500e-03 : f32
    %154 = vector.broadcast %cst_41 : f32 to vector<8x1xf32>
    %155 = arith.mulf %151, %154 : vector<8x1xf32>
    %156 = arith.mulf %153, %153 : vector<8x1xf32>
    %157 = arith.subf %155, %156 : vector<8x1xf32>
    %cst_42 = arith.constant 0.000000e+00 : f32
    %158 = vector.broadcast %cst_42 : f32 to vector<8x1xf32>
    %159 = arith.maximumf %157, %158 : vector<8x1xf32>
    %160 = vector.broadcast %153 : vector<8x1xf32> to vector<8x128xf32>
    %161 = arith.subf %144, %160 : vector<8x128xf32>
    %cst_43 = arith.constant 9.99999974E-6 : f32
    %162 = vector.broadcast %cst_43 : f32 to vector<8x1xf32>
    %163 = arith.addf %159, %162 : vector<8x1xf32>
    %164 = math.rsqrt %163 : vector<8x1xf32>
    %165 = vector.broadcast %164 : vector<8x1xf32> to vector<8x128xf32>
    %166 = arith.mulf %161, %165 : vector<8x128xf32>
    %167 = vector.broadcast %145 : vector<1x128xf32> to vector<8x128xf32>
    %168 = arith.mulf %166, %167 : vector<8x128xf32>
    %169 = vector.broadcast %146 : vector<1x128xf32> to vector<8x128xf32>
    %170 = arith.addf %168, %169 : vector<8x128xf32>
    %cst_44 = arith.constant 0.000000e+00 : f32
    %171 = vector.broadcast %cst_44 : f32 to vector<8x128xf32>
    %172 = arith.maximumf %170, %171 : vector<8x128xf32>
    %173 = vector.extract_strided_slice %2 {offsets = [0, 128], sizes = [128, 64], strides = [1, 1]} : vector<131x192xf32> to vector<128x64xf32>
    %cst_45 = arith.constant dense<0.000000e+00> : vector<8x64xf32>
    %174 = tpu.matmul %172, %173, %cst_45 {dimension_numbers = #tpu.dot_dimension_numbers<[1], [0], [0], [1], [0, 0, 1, 1], [], []>} : vector<8x128xf32>, vector<128x64xf32>, vector<8x64xf32> -> vector<8x64xf32>
    %175 = vector.extract_strided_slice %2 {offsets = [128, 128], sizes = [1, 64], strides = [1, 1]} : vector<131x192xf32> to vector<1x64xf32>
    %176 = vector.broadcast %175 : vector<1x64xf32> to vector<8x64xf32>
    %177 = arith.addf %174, %176 : vector<8x64xf32>
    %178 = vector.extract_strided_slice %2 {offsets = [129, 128], sizes = [1, 64], strides = [1, 1]} : vector<131x192xf32> to vector<1x64xf32>
    %179 = vector.extract_strided_slice %2 {offsets = [130, 128], sizes = [1, 64], strides = [1, 1]} : vector<131x192xf32> to vector<1x64xf32>
    %cst_46 = arith.constant dense<0.000000e+00> : vector<8xf32>
    %180 = vector.multi_reduction <add>, %177, %cst_46 [1] : vector<8x64xf32> to vector<8xf32>
    %181 = vector.shape_cast %180 : vector<8xf32> to vector<8x1xf32>
    %182 = arith.mulf %177, %177 : vector<8x64xf32>
    %cst_47 = arith.constant dense<0.000000e+00> : vector<8xf32>
    %183 = vector.multi_reduction <add>, %182, %cst_47 [1] : vector<8x64xf32> to vector<8xf32>
    %184 = vector.shape_cast %183 : vector<8xf32> to vector<8x1xf32>
    %cst_48 = arith.constant 1.562500e-02 : f32
    %185 = vector.broadcast %cst_48 : f32 to vector<8x1xf32>
    %186 = arith.mulf %181, %185 : vector<8x1xf32>
    %cst_49 = arith.constant 1.562500e-02 : f32
    %187 = vector.broadcast %cst_49 : f32 to vector<8x1xf32>
    %188 = arith.mulf %184, %187 : vector<8x1xf32>
    %189 = arith.mulf %186, %186 : vector<8x1xf32>
    %190 = arith.subf %188, %189 : vector<8x1xf32>
    %cst_50 = arith.constant 0.000000e+00 : f32
    %191 = vector.broadcast %cst_50 : f32 to vector<8x1xf32>
    %192 = arith.maximumf %190, %191 : vector<8x1xf32>
    %193 = vector.broadcast %186 : vector<8x1xf32> to vector<8x64xf32>
    %194 = arith.subf %177, %193 : vector<8x64xf32>
    %cst_51 = arith.constant 9.99999974E-6 : f32
    %195 = vector.broadcast %cst_51 : f32 to vector<8x1xf32>
    %196 = arith.addf %192, %195 : vector<8x1xf32>
    %197 = math.rsqrt %196 : vector<8x1xf32>
    %198 = vector.broadcast %197 : vector<8x1xf32> to vector<8x64xf32>
    %199 = arith.mulf %194, %198 : vector<8x64xf32>
    %200 = vector.broadcast %178 : vector<1x64xf32> to vector<8x64xf32>
    %201 = arith.mulf %199, %200 : vector<8x64xf32>
    %202 = vector.broadcast %179 : vector<1x64xf32> to vector<8x64xf32>
    %203 = arith.addf %201, %202 : vector<8x64xf32>
    %cst_52 = arith.constant 0.000000e+00 : f32
    %204 = vector.broadcast %cst_52 : f32 to vector<8x64xf32>
    %205 = arith.maximumf %203, %204 : vector<8x64xf32>
    %206 = vector.extract_strided_slice %3 {offsets = [2, 0], sizes = [1, 64], strides = [1, 1]} : vector<4x64xf32> to vector<1x64xf32>
    %207 = vector.broadcast %206 : vector<1x64xf32> to vector<8x64xf32>
    %208 = arith.mulf %205, %207 : vector<8x64xf32>
    %209 = arith.addf %143, %208 : vector<8x64xf32>
    %cst_53 = arith.constant dense<0.000000e+00> : vector<8xf32>
    %210 = vector.multi_reduction <add>, %209, %cst_53 [1] : vector<8x64xf32> to vector<8xf32>
    %211 = vector.shape_cast %210 : vector<8xf32> to vector<8x1xf32>
    %212 = vector.extract_strided_slice %3 {offsets = [3, 0], sizes = [1, 1], strides = [1, 1]} : vector<4x64xf32> to vector<1x1xf32>
    %213 = vector.broadcast %212 : vector<1x1xf32> to vector<8x1xf32>
    %214 = arith.addf %211, %213 : vector<8x1xf32>
    %c0_54 = arith.constant 0 : index
    %c0_55 = arith.constant 0 : index
    %215 = vector.load %arg4[%c0_54, %c0_55] : memref<8x1xf32, #tpu.memory_space<vmem>>, vector<8x1xf32>
    tpu.vector_store %arg4[%c0_54, %c0_55], %214 {strides = array<i32>} : memref<8x1xf32, #tpu.memory_space<vmem>>, vector<8x1xf32>,
    return
  }
}

</mosaic_0001>

<bundles_post_ra>
// kernel: ensemble_mlp_forward.1
= control target key start
LH: loop header
LB: loop body
LE: loop exit
PB: predicated region body
PF: predicated region fallthrough
CT: control target
= control target key end

     0   :  { %9 = vsyncpa [#allocation3], 0  ;;  %s848_s0 = inlined_call_operand.hbm [shape: f32[8,32], index: 0, kind: input, shape index: {}]   ;;  %s849_s1 = inlined_call_operand.hbm [shape: f32[35,384], index: 1, kind: input, shape index: {}]   ;;  %s850_s2 = inlined_call_operand.hbm [shape: f32[131,192], index: 2, kind: input, shape index: {}]   ;;  %s851_s3 = inlined_call_operand.hbm [shape: f32[4,64], index: 3, kind: input, shape index: {}]   ;;  %s852_s4 = inlined_call_operand.vmem [shape: f32[8,1], index: 4, kind: output, shape index: {}]  }
   0x1   :  { %10 = vsyncpa [#allocation5], 0  ;;  %s27_s17 = sshll.u32 %s849_s1, 4  ;;  %s28_s17 = int_to_ptr.hbm [resolvable:$true] %s27_s17 }
   0x2   :  { %11 = vsyncpa [#allocation8], 0  ;;  %s694_s18 = smov [#allocation4]   ;;  %s17_s22 = sshll.u32 %s848_s0, 4  ;;  %s18_s22 = int_to_ptr.hbm [resolvable:$true] %s17_s22 }
   0x3   :  { %s29_s19 = sshll.u32 %s694_s18, 4  ;;  %s695_s23 = smov 384   ;;  %s30_s19 = int_to_ptr.vmem [resolvable:$true] %s29_s19 }
   0x4   :  { %s696_s24 = smov 24   ;;  %s697_s25 = smov [#allocation2]  }
   0x5   :  { %35 = dma.hbm_to_vmem [thread:$0]  %s28_s17, 1920, %s30_s19, [#allocation5], %s695_s23, %s695_s23, %s696_s24  }
   0x6   :  { %s19_s26 = sshll.u32 %s697_s25, 4  ;;  %s40_s29 = sshll.u32 %s850_s2, 4  ;;  %s20_s26 = int_to_ptr.vmem [resolvable:$true] %s19_s26  ;;  %s41_s29 = int_to_ptr.hbm [resolvable:$true] %s40_s29 }
   0x7   :  { %22 = dma.hbm_to_vmem [thread:$0]  %s18_s22, 128, %s20_s26, [#allocation3]  }
   0x8   :  { %s698_s1 = smov [#allocation6]   ;;  %s54_s0 = sshll.u32 %s851_s3, 4  ;;  %s55_s0 = int_to_ptr.hbm [resolvable:$true] %s54_s0 }
   0x9   :  { %s42_s30 = sshll.u32 %s698_s1, 4  ;;  %s699_s7 = smov 256   ;;  %s43_s30 = int_to_ptr.vmem [resolvable:$true] %s42_s30 }
   0xa   :  { %s700_s8 = smov 16   ;;  %s701_s9 = smov [#allocation7]  }
   0xb   :  { %48 = dma.hbm_to_vmem [thread:$0]  %s41_s29, 4352, %s43_s30, [#allocation5], %s699_s7, %s699_s7, %s700_s8  }
   0xc   :  { %s56_s10 = sshll.u32 %s701_s9, 4  ;;  %s57_s10 = int_to_ptr.vmem [resolvable:$true] %s56_s10 }
   0xd   :  { %59 = dma.hbm_to_vmem [thread:$0]  %s55_s0, 64, %s57_s10, [#allocation8]  }
   0xe   :  { %688 = dma.done.wait [#allocation3], 128  }
   0xf   :  { %689 = vsyncadd [#allocation3], 4294967168 }
  0x10   :  { %690 = dma.done.wait [#allocation5], 6272  }
  0x11   :  { %691 = vsyncadd [#allocation5], 4294961024 }
  0x12   :  { %692 = dma.done.wait [#allocation8], 64  }
  0x13   :  { %693 = vsyncadd [#allocation8], 4294967232  ;;  %v86_v0 = vld [vmem:[#allocation4 + $0x48] sm:$0xff]  ;;  %v83_v1 = vld [vmem:[#allocation4 + $0x30] sm:$0xff]  ;;  %vm130_vm0 = vcmask 261120   ;;  %s702_s2 = smov 64  }
  0x14   :  { %146 = vmatpush.msra.mxu2 %v86_v0  ;;  %v80_v2 = vld [vmem:[#allocation4 + $0x18] sm:$0xff]  ;;  %v77_v3 = vld [vmem:[#allocation4] sm:$0xff]  ;;  %v122_v5 = vld [vmem:[#allocation6 + $0xf0] sm:$0xff]  ;;  %vm243_vm10 = vcmask 523264  }
  0x15   :  { %v120_v4 = vld [vmem:[#allocation6 + $0xe0] sm:$0xff]  ;;  %v118_v9 = vld [vmem:[#allocation6 + $0xd0] sm:$0xff]  ;;  %223 = vmatpush.msra.mxu3 %v122_v5  ;;  %v87_v10 = vld [vmem:[#allocation4 + $0x50] sm:$0xff] }
  0x16   :  { %147 = vmatpush.msra.mxu2 %v83_v1  ;;  %v76_v6 = vld [vmem:[#allocation2] sm:$0xff]  ;;  %v540_v7 = vpack.i.bf16 %v120_v4, %v122_v5  ;;  %v114_v13 = vld [vmem:[#allocation6 + $0xb0] sm:$0xff]  ;;  %v81_v18 = vld [vmem:[#allocation4 + $0x20] sm:$0xff] }
  0x17   :  { %v116_v8 = vld [vmem:[#allocation6 + $0xc0] sm:$0xff]  ;;  %v110_v17 = vld [vmem:[#allocation6 + $0x90] sm:$0xff]  ;;  %224 = vmatpush.msra.mxu3 %v120_v4  ;;  %v85_v25 = vld [vmem:[#allocation4 + $0x40] sm:$0xff] }
  0x18   :  { %148 = vmatpush.msra.mxu2 %v80_v2  ;;  %v545_v11 = vpack.i.bf16 %v116_v8, %v118_v9  ;;  %v112_v12 = vld [vmem:[#allocation6 + $0xa0] sm:$0xff]  ;;  %541 = vrot.lane.b32.xlu0 %v540_v7, %s702_s2  ;;  %v106_v20 = vld [vmem:[#allocation6 + $0x70] sm:$0xff]  ;;  %v79_v27 = vld [vmem:[#allocation4 + $0x10] sm:$0xff] }
  0x19   :  { %v550_v14 = vpack.i.bf16 %v112_v12, %v114_v13  ;;  %v84_v15 = vld [vmem:[#allocation4 + $0x38] sm:$0xff]  ;;  %v78_v22 = vld [vmem:[#allocation4 + $0x8] sm:$0xff]  ;;  %225 = vmatpush.msra.mxu3 %v118_v9  ;;  %v748_v28 = vld [vmem:[#allocation4 + $0x60] sm:$0x7] }
  0x1a   :  { %149 = vmatpush.msra.mxu2 %v77_v3  ;;  %546 = vrot.lane.b32.xlu1 %v545_v11, %s702_s2  ;;  %v108_v16 = vld [vmem:[#allocation6 + $0x80] sm:$0xff]  ;;  %v82_v26 = vld [vmem:[#allocation4 + $0x28] sm:$0xff]  ;;  %v127_v30 = vperm.slane %v748_v28, 0  ;;  %v761_v39 = vld [vmem:[#allocation4 + $0x70] sm:$0x7] }
  0x1b   :  { %528 = vmatmul.msk.f32.vlgmr.msra.gmra.mxu2 %vm130_vm0, %v76_v6  ;;  %551 = vrot.lane.b32.xlu2 %v550_v14, %s702_s2  ;;  %v104_v19 = vld [vmem:[#allocation6 + $0x60] sm:$0xff]  ;;  %v555_v21 = vpack.i.bf16 %v108_v16, %v110_v17  ;;  %v102_v29 = vld [vmem:[#allocation6 + $0x50] sm:$0xff]  ;;  %v129_v42 = vperm.slane %v761_v39, 0  ;;  %v123_v3 = vld [vmem:[#allocation6 + $0xf8] sm:$0xff] }
  0x1c   :  { %166 = vmatpush.msrb.mxu2 %v87_v10  ;;  %v560_v23 = vpack.i.bf16 %v104_v19, %v106_v20  ;;  %v88_v24 = vld [vmem:[#allocation4 + $0x58] sm:$0xff]  ;;  %226 = vmatpush.msra.mxu3 %v116_v8  ;;  %v753_v34 = vld [vmem:[#allocation4 + $0x68] sm:$0x7]  ;;  %v121_v4 = vld [vmem:[#allocation6 + $0xe8] sm:$0xff] }
  0x1d   :  { %v100_v31 = vld [vmem:[#allocation6 + $0x40] sm:$0xff]  ;;  %v128_v35 = vperm.slane %v753_v34, 0  ;;  %v98_v40 = vld [vmem:[#allocation6 + $0x30] sm:$0xff]  ;;  %461 = vmatpush.msra.mxu1 %v123_v3  ;;  %v119_v5 = vld [vmem:[#allocation6 + $0xd8] sm:$0xff] }
  0x1e   :  { %167 = vmatpush.msrb.mxu2 %v84_v15  ;;  %227 = vmatpush.msra.mxu3 %v114_v13  ;;  %v96_v46 = vld [vmem:[#allocation6 + $0x20] sm:$0xff]  ;;  %v94_v50 = vld [vmem:[#allocation6 + $0x10] sm:$0xff]  ;;  %v565_v1 = vpack.i.bf16 %v100_v31, %v102_v29  ;;  %v117_v7 = vld [vmem:[#allocation6 + $0xc8] sm:$0xff] }
  0x1f   :  { %v92_v54 = vld [vmem:[#allocation6] sm:$0xff]  ;;  %v570_v62 = vpack.i.bf16 %v96_v46, %v98_v40  ;;  %462 = vmatpush.msra.mxu1 %v121_v4  ;;  %v115_v8 = vld [vmem:[#allocation6 + $0xb8] sm:$0xff]  ;;  %v113_v10 = vld [vmem:[#allocation6 + $0xa8] sm:$0xff] }
  0x20   :  { %168 = vmatpush.msrb.mxu2 %v81_v18  ;;  %556 = vrot.lane.b32.xlu0 %v555_v21, %s702_s2  ;;  %v575_v2 = vpack.i.bf16 %v92_v54, %v94_v50  ;;  %v111_v11 = vld [vmem:[#allocation6 + $0x98] sm:$0xff]  ;;  %v105_v21 = vld [vmem:[#allocation6 + $0x68] sm:$0xff] }
  0x21   :  { %228 = vmatpush.msra.mxu3 %v112_v12  ;;  %463 = vmatpush.msra.mxu1 %v119_v5  ;;  %v107_v18 = vld [vmem:[#allocation6 + $0x78] sm:$0xff] }
  0x22   :  { %169 = vmatpush.msrb.mxu2 %v78_v22 }
  0x23   :  { %529 = vmatmul.msk.f32.vlgmr.msrb.gmra.mxu2 %vm130_vm0, %v76_v6  ;;  %561 = vrot.lane.b32.xlu2 %v560_v23, %s702_s2  ;;  %v103_v23 = vld [vmem:[#allocation6 + $0x58] sm:$0xff] }
  0x24   :  { %186 = vmatpush.msra.mxu2 %v88_v24  ;;  %229 = vmatpush.msra.mxu3 %v110_v17 }
  0x25   :  { %464 = vmatpush.msra.mxu1 %v117_v7 }
  0x26   :  { %187 = vmatpush.msra.mxu2 %v85_v25  ;;  %230 = vmatpush.msra.mxu3 %v108_v16  ;;  %v109_v16 = vld [vmem:[#allocation6 + $0x88] sm:$0xff] }
  0x27   :  { %465 = vmatpush.msra.mxu1 %v115_v8 }
  0x28   :  { %188 = vmatpush.msra.mxu2 %v82_v26  ;;  %231 = vmatpush.msra.mxu3 %v106_v20 }
  0x29   :  { %466 = vmatpush.msra.mxu1 %v113_v10 }
  0x2a   :  { %189 = vmatpush.msra.mxu2 %v79_v27  ;;  %232 = vmatpush.msra.mxu3 %v104_v19 }
  0x2b   :  { %530 = vmatmul.msk.f32.vlgmr.msra.gmra.mxu2 %vm130_vm0, %v76_v6  ;;  %467 = vmatpush.msra.mxu1 %v111_v11 }
  0x2c   :  { %233 = vmatpush.msra.mxu3 %v102_v29  ;;  %v101_v29 = vld [vmem:[#allocation6 + $0x48] sm:$0xff] }
  0x2d   :  { %468 = vmatpush.msra.mxu1 %v109_v16 }
  0x2e   :  { %234 = vmatpush.msra.mxu3 %v100_v31  ;;  %v99_v31 = vld [vmem:[#allocation6 + $0x38] sm:$0xff] }
  0x2f   :  { %469 = vmatpush.msra.mxu1 %v107_v18 }
  0x30   :  { %235 = vmatpush.msra.mxu3 %v98_v40 }
  0x31   :  { %470 = vmatpush.msra.mxu1 %v105_v21 }
  0x32   :  { %236 = vmatpush.msra.mxu3 %v96_v46 }
  0x33   :  { %471 = vmatpush.msra.mxu1 %v103_v23 }
  0x34   :  { %237 = vmatpush.msra.mxu3 %v94_v50 }
  0x35   :  { %472 = vmatpush.msra.mxu1 %v101_v29 }
  0x36   :  { %238 = vmatpush.msra.mxu3 %v92_v54 }
  0x37   :  { %473 = vmatpush.msra.mxu1 %v99_v31 }
  0x75   :  { %v552_v47 = vpop.permute.xlu2 %551 }
  0x76   :  { %v553_v55 = vunpack.i.l.bf16 %v552_v47  ;;  %v554_v57 = vunpack.i.h.bf16 %v552_v47 }
  0x7d   :  { %v562_v60 = vpop.permute.xlu2 %561 }
  0x7e   :  { %v563_v63 = vunpack.i.l.bf16 %v562_v60  ;;  %v564_v0 = vunpack.i.h.bf16 %v562_v60  ;;  %v217_v60 = vperm.slane %v748_v28, 1 }
  0x8a   :  { %v542_v41 = vpop.permute.xlu0 %541 }
  0x8b   :  { %v543_v43 = vunpack.i.l.bf16 %v542_v41  ;;  %v544_v45 = vunpack.i.h.bf16 %v542_v41 }
  0x8c   :  { %v547_v44 = vpop.permute.xlu1 %546 }
  0x8d   :  { %373 = vmatpush.msra.mxu0 %v543_v43  ;;  %v548_v49 = vunpack.i.l.bf16 %v547_v44  ;;  %v549_v53 = vunpack.i.h.bf16 %v547_v44 }
  0x8f   :  { %374 = vmatpush.msra.mxu0 %v544_v45 }
  0x91   :  { %375 = vmatpush.msra.mxu0 %v548_v49  ;;  %v787_v49 = vld [vmem:[#allocation6 + $0x100] sm:$0x7] }
  0x92   :  { %v557_v56 = vpop.permute.xlu0 %556 }
  0x93   :  { %376 = vmatpush.msra.mxu0 %v549_v53  ;;  %v558_v58 = vunpack.i.l.bf16 %v557_v56  ;;  %v559_v61 = vunpack.i.h.bf16 %v557_v56 }
  0x95   :  { %377 = vmatpush.msra.mxu0 %v553_v55 }
  0x97   :  { %378 = vmatpush.msra.mxu0 %v554_v57 }
  0x99   :  { %379 = vmatpush.msra.mxu0 %v558_v58 }
  0x9b   :  { %380 = vmatpush.msra.mxu0 %v559_v61 }
  0x9d   :  { %381 = vmatpush.msra.mxu0 %v563_v63 }
  0x9e   :  { %v151_v32 = vpop.f32.mrf.mxu2 }
  0x9f   :  { %v751_v33 = vadd.f32 %v151_v32, %v127_v30  ;;  %382 = vmatpush.msra.mxu0 %v564_v0  ;;  %v219_v0 = vperm.slane %v748_v28, 2 }
  0xa1   :  { %194 = vadd.xlane.f32.xlu0 %v751_v33  ;;  %v196_v38 = vmul.f32 %v751_v33, %v751_v33 }
  0xa6   :  { %v171_v36 = vpop.f32.mrf.mxu2 }
  0xa7   :  { %v757_v37 = vadd.f32 %v171_v36, %v128_v35  ;;  %v97_v35 = vld [vmem:[#allocation6 + $0x28] sm:$0xff]  ;;  %v95_v36 = vld [vmem:[#allocation6 + $0x18] sm:$0xff] }
  0xa8   :  { %474 = vmatpush.msra.mxu1 %v97_v35 }
  0xa9   :  { %277 = vadd.xlane.f32.xlu1 %v757_v37  ;;  %197 = vadd.xlane.f32.xlu0 %v196_v38  ;;  %v279_v52 = vmul.f32 %v757_v37, %v757_v37 }
  0xaa   :  { %475 = vmatpush.msra.mxu1 %v95_v36 }
  0xae   :  { %v191_v48 = vpop.f32.mrf.mxu2 }
  0xaf   :  { %v765_v51 = vadd.f32 %v191_v48, %v129_v42  ;;  %v93_v42 = vld [vmem:[#allocation6 + $0x8] sm:$0xff] }
  0xb0   :  { %476 = vmatpush.msra.mxu1 %v93_v42  ;;  %v813_v42 = vld [vmem:[#allocation6 + $0x108] sm:$0x7] }
  0xb1   :  { %432 = vadd.xlane.f32.xlu2 %v765_v51  ;;  %280 = vadd.xlane.f32.xlu1 %v279_v52  ;;  %v434_v59 = vmul.f32 %v765_v51, %v765_v51  ;;  %v222_v52 = vperm.slane %v787_v49, 0 }
  0xb9   :  { %435 = vadd.xlane.f32.xlu2 %v434_v59 }
  0xbd   :  { %571 = vrot.lane.b32.xlu0 %v570_v62, %s702_s2 }
  0xca   :  { %566 = vrot.lane.b32.xlu1 %v565_v1, %s702_s2 }
  0xd1   :  { %576 = vrot.lane.b32.xlu2 %v575_v2, %s702_s2 }
  0xd2   :  { %370 = vrot.lane.b32.xlu1 %v222_v52, %s702_s2 }
 0x114   :  { %v195_v6 = vpop.xlane.xlu0 %194 }
 0x115   :  { %v775_v9 = vmul.f32 0.0078125, %v195_v6 }
 0x117   :  { %v201_v14 = vmul.f32 %v775_v9, %v775_v9  ;;  %v204_v59 = vsub.f32 %v751_v33, %v775_v9 }
 0x11c   :  { %v278_v12 = vpop.xlane.xlu1 %277  ;;  %v198_v13 = vpop.xlane.xlu0 %197 }
 0x11d   :  { %v200_v15 = vmul.f32 0.0078125, %v198_v13  ;;  %v779_v19 = vmul.f32 0.0078125, %v278_v12  ;;  %v300_v12 = vperm.slane %v753_v34, 1 }
 0x11f   :  { %v202_v17 = vsub.f32 %v200_v15, %v201_v14  ;;  %v284_v26 = vmul.f32 %v779_v19, %v779_v19  ;;  %v287_v9 = vsub.f32 %v757_v37, %v779_v19 }
 0x121   :  { %v203_v20 = vmax.f32 %v202_v17, 0.0 }
 0x123   :  { %v205_v22 = vadd.f32 1e-05, %v203_v20  ;;  %v302_v20 = vperm.slane %v753_v34, 2 }
 0x124   :  { %v433_v24 = vpop.xlane.xlu2 %432  ;;  %v281_v25 = vpop.xlane.xlu1 %280 }
 0x125   :  { %580 = vrsqrt.f32 %v205_v22  ;;  %v283_v27 = vmul.f32 0.0078125, %v281_v25  ;;  %v783_v40 = vmul.f32 0.0078125, %v433_v24  ;;  %vm212_vm2 = vweird.f32 %v205_v22 }
 0x127   :  { %v285_v30 = vsub.f32 %v283_v27, %v284_v26  ;;  %v439_v45 = vmul.f32 %v783_v40, %v783_v40  ;;  %v442_v25 = vsub.f32 %v765_v51, %v783_v40  ;;  %v455_v26 = vperm.slane %v761_v39, 1 }
 0x129   :  { %v286_v32 = vmax.f32 %v285_v30, 0.0  ;;  %v457_v30 = vperm.slane %v761_v39, 2 }
 0x12b   :  { %v581_v38 = vpop.eup %580  ;;  %v288_v41 = vadd.f32 1e-05, %v286_v32 }
 0x12c   :  { %v207_v43 = vmul.f32 %v581_v38, %v205_v22  ;;  %v436_v44 = vpop.xlane.xlu2 %435  ;;  %vm213_vm1 = vweird.f32 %v581_v38 }
 0x12d   :  { %582 = vrsqrt.f32 %v288_v41  ;;  %v438_v46 = vmul.f32 0.0078125, %v436_v44  ;;  %vm214_vm3 = vmor %vm212_vm2, %vm213_vm1  ;;  %vm295_vm5 = vweird.f32 %v288_v41 }
 0x12e   :  { %v208_v47 = vmul.f32 %v581_v38, %v207_v43 }
 0x12f   :  { %v440_v48 = vsub.f32 %v438_v46, %v439_v45  ;;  %v572_v8 = vpop.permute.xlu0 %571  ;;  %v460_v46 = vperm.slane %v813_v42, 0 }
 0x130   :  { %v209_v50 = vmul.f32 0.5, %v208_v47  ;;  %v573_v15 = vunpack.i.l.bf16 %v572_v8  ;;  %v574_v37 = vunpack.i.h.bf16 %v572_v8 }
 0x131   :  { %v441_v53 = vmax.f32 %v440_v48, 0.0 }
 0x132   :  { %v210_v54 = vsub.f32 1.5, %v209_v50 }
 0x133   :  { %v583_v55 = vpop.eup %582  ;;  %v443_v56 = vadd.f32 1e-05, %v441_v53 }
 0x134   :  { %v290_v57 = vmul.f32 %v583_v55, %v288_v41  ;;  %v211_v58 = vmul.f32 %v581_v38, %v210_v54  ;;  %vm296_vm4 = vweird.f32 %v583_v55  ;;  %v577_v18 = vpop.permute.xlu2 %576 }
 0x135   :  { %584 = vrsqrt.f32 %v443_v56  ;;  %vm297_vm6 = vmor %vm295_vm5, %vm296_vm4  ;;  %v578_v19 = vunpack.i.l.bf16 %v577_v18  ;;  %vm450_vm8 = vweird.f32 %v443_v56  ;;  %v579_v34 = vunpack.i.h.bf16 %v577_v18 }
 0x136   :  { %v291_v61 = vmul.f32 %v583_v55, %v290_v57  ;;  %v215_v62 = vsel %vm214_vm3, %v581_v38, %v211_v58  ;;  %v269_v57 = vperm.slane %v787_v49, 1  ;;  %v271_v58 = vperm.slane %v787_v49, 2 }
 0x137   :  { %v216_v63 = vmul.f32 %v215_v62, %v204_v59  ;;  %vm519_vm4 = vcmask 7168  }
 0x138   :  { %v292_v1 = vmul.f32 0.5, %v291_v61 }
 0x139   :  { %v218_v2 = vmul.f32 %v217_v60, %v216_v63 }
 0x13a   :  { %v293_v3 = vsub.f32 1.5, %v292_v1 }
 0x13b   :  { %v585_v4 = vpop.eup %584  ;;  %v220_v5 = vadd.f32 %v219_v0, %v218_v2 }
 0x13c   :  { %v445_v6 = vmul.f32 %v585_v4, %v443_v56  ;;  %v567_v7 = vpop.permute.xlu1 %566  ;;  %v294_v33 = vmul.f32 %v583_v55, %v293_v3  ;;  %vm451_vm7 = vweird.f32 %v585_v4 }
 0x13d   :  { %v221_v10 = vmax.f32 %v220_v5, 0.0  ;;  %v568_v11 = vunpack.i.l.bf16 %v567_v7  ;;  %v569_v14 = vunpack.i.h.bf16 %v567_v7  ;;  %vm452_vm9 = vmor %vm450_vm8, %vm451_vm7 }
 0x13e   :  { %v446_v28 = vmul.f32 %v585_v4, %v445_v6  ;;  %v298_v13 = vsel %vm297_vm6, %v583_v55, %v294_v33 }
 0x13f   :  { %239 = vmatmul.f32.vlgmr.msra.gmra.mxu3 %v221_v10  ;;  %383 = vmatpush.msra.mxu0 %v568_v11  ;;  %v299_v16 = vmul.f32 %v298_v13, %v287_v9 }
 0x140   :  { %v447_v17 = vmul.f32 0.5, %v446_v28 }
 0x141   :  { %384 = vmatpush.msra.mxu0 %v569_v14  ;;  %v301_v21 = vmul.f32 %v300_v12, %v299_v16 }
 0x142   :  { %v448_v22 = vsub.f32 1.5, %v447_v17 }
 0x143   :  { %385 = vmatpush.msra.mxu0 %v573_v15  ;;  %v303_v23 = vadd.f32 %v302_v20, %v301_v21 }
 0x144   :  { %v449_v24 = vmul.f32 %v585_v4, %v448_v22  ;;  %v371_v41 = vpop.permute.xlu1 %370 }
 0x145   :  { %386 = vmatpush.msra.mxu0 %v574_v37  ;;  %v304_v31 = vmax.f32 %v303_v23, 0.0 }
 0x146   :  { %v453_v27 = vsel %vm452_vm9, %v585_v4, %v449_v24 }
 0x147   :  { %387 = vmatpush.msra.mxu0 %v578_v19  ;;  %v454_v29 = vmul.f32 %v453_v27, %v442_v25 }
 0x149   :  { %388 = vmatpush.msra.mxu0 %v579_v34  ;;  %v456_v32 = vmul.f32 %v455_v26, %v454_v29 }
 0x14a   :  { %389 = vmatmul.f32.vlgmr.msra.gmra.mxu0 %v304_v31 }
 0x14b   :  { %v458_v35 = vadd.f32 %v457_v30, %v456_v32 }
 0x14d   :  { %v459_v36 = vmax.f32 %v458_v35, 0.0 }
 0x14f   :  { %477 = vmatmul.f32.vlgmr.msra.gmra.mxu1 %v459_v36 }
 0x1c2   :  { %v240_v38 = vpop.f32.mrf.mxu3 }
 0x1c3   :  { %v807_v51 = vadd.f32 %v240_v38, %v222_v52 }
 0x1c5   :  { %v244_v40 = vsel %vm243_vm10, %v807_v51, 0.0  ;;  %v247_v39 = vmul.f32 %v807_v51, %v807_v51 }
 0x1c6   :  { %245 = vadd.xlane.f32.xlu0 %v244_v40 }
 0x1c7   :  { %v390_v43 = vpop.f32.mrf.mxu0  ;;  %v248_v44 = vsel %vm243_vm10, %v247_v39, 0.0 }
 0x1c8   :  { %v816_v45 = vadd.f32 %v390_v43, %v371_v41  ;;  %249 = vadd.xlane.f32.xlu1 %v248_v44 }
 0x1ca   :  { %v393_v47 = vsel %vm243_vm10, %v816_v45, 0.0  ;;  %v396_v48 = vmul.f32 %v816_v45, %v816_v45 }
 0x1cb   :  { %394 = vadd.xlane.f32.xlu2 %v393_v47 }
 0x1cc   :  { %v478_v50 = vpop.f32.mrf.mxu1  ;;  %v397_v52 = vsel %vm243_vm10, %v396_v48, 0.0 }
 0x1cd   :  { %v824_v53 = vadd.f32 %v478_v50, %v460_v46  ;;  %v506_v50 = vperm.slane %v813_v42, 1 }
 0x1ce   :  { %398 = vadd.xlane.f32.xlu0 %v397_v52 }
 0x1cf   :  { %v484_v54 = vmul.f32 %v824_v53, %v824_v53  ;;  %v481_v56 = vsel %vm243_vm10, %v824_v53, 0.0 }
 0x1d1   :  { %v485_v55 = vsel %vm243_vm10, %v484_v54, 0.0 }
 0x1d2   :  { %486 = vadd.xlane.f32.xlu1 %v485_v55  ;;  %v126_v55 = vld [vmem:[#allocation7] sm:$0xf] }
 0x1d3   :  { %482 = vadd.xlane.f32.xlu2 %v481_v56  ;;  %v508_v56 = vperm.slane %v813_v42, 2 }
 0x1e2   :  { %419 = vrot.lane.b32.xlu0 %v269_v57, %s702_s2 }
 0x1eb   :  { %424 = vrot.lane.b32.xlu2 %v271_v58, %s702_s2 }
 0x239   :  { %v246_v59 = vpop.xlane.xlu0 %245 }
 0x23a   :  { %v251_v60 = vmul.f32 0.015625, %v246_v59 }
 0x23b   :  { %v250_v61 = vpop.xlane.xlu1 %249 }
 0x23c   :  { %v253_v62 = vmul.f32 %v251_v60, %v251_v60  ;;  %v252_v63 = vmul.f32 0.015625, %v250_v61  ;;  %v256_v34 = vsub.f32 %v807_v51, %v251_v60 }
 0x23e   :  { %v254_v0 = vsub.f32 %v252_v63, %v253_v62  ;;  %v395_v1 = vpop.xlane.xlu2 %394  ;;  %v274_v63 = vperm.slane %v126_v55, 0 }
 0x23f   :  { %v400_v2 = vmul.f32 0.015625, %v395_v1 }
 0x240   :  { %v255_v3 = vmax.f32 %v254_v0, 0.0 }
 0x241   :  { %v402_v4 = vmul.f32 %v400_v2, %v400_v2  ;;  %v399_v5 = vpop.xlane.xlu0 %398  ;;  %v405_v35 = vsub.f32 %v816_v45, %v400_v2  ;;  %v511_v2 = vperm.slane %v126_v55, 2 }
 0x242   :  { %v257_v6 = vadd.f32 1e-05, %v255_v3  ;;  %v401_v7 = vmul.f32 0.015625, %v399_v5 }
 0x244   :  { %586 = vrsqrt.f32 %v257_v6  ;;  %v403_v8 = vsub.f32 %v401_v7, %v402_v4  ;;  %vm264_vm12 = vweird.f32 %v257_v6 }
 0x245   :  { %v487_v9 = vpop.xlane.xlu1 %486 }
 0x246   :  { %v404_v33 = vmax.f32 %v403_v8, 0.0  ;;  %v483_v10 = vpop.xlane.xlu2 %482  ;;  %v489_v28 = vmul.f32 0.015625, %v487_v9 }
 0x247   :  { %v488_v11 = vmul.f32 0.015625, %v483_v10 }
 0x248   :  { %v406_v12 = vadd.f32 1e-05, %v404_v33 }
 0x249   :  { %v490_v13 = vmul.f32 %v488_v11, %v488_v11  ;;  %v493_v52 = vsub.f32 %v824_v53, %v488_v11 }
 0x24a   :  { %v587_v14 = vpop.eup %586  ;;  %588 = vrsqrt.f32 %v406_v12  ;;  %vm413_vm15 = vweird.f32 %v406_v12 }
 0x24b   :  { %v259_v15 = vmul.f32 %v587_v14, %v257_v6  ;;  %v491_v16 = vsub.f32 %v489_v28, %v490_v13  ;;  %vm265_vm11 = vweird.f32 %v587_v14 }
 0x24c   :  { %vm266_vm13 = vmor %vm264_vm12, %vm265_vm11 }
 0x24d   :  { %v260_v17 = vmul.f32 %v587_v14, %v259_v15  ;;  %v492_v18 = vmax.f32 %v491_v16, 0.0 }
 0x24e   :  { %v425_v43 = vpop.permute.xlu2 %424 }
 0x24f   :  { %v261_v20 = vmul.f32 0.5, %v260_v17  ;;  %v494_v21 = vadd.f32 1e-05, %v492_v18 }
 0x250   :  { %v589_v22 = vpop.eup %588 }
 0x251   :  { %v262_v37 = vsub.f32 1.5, %v261_v20  ;;  %v408_v19 = vmul.f32 %v589_v22, %v406_v12  ;;  %590 = vrsqrt.f32 %v494_v21  ;;  %vm414_vm14 = vweird.f32 %v589_v22 }
 0x252   :  { %vm415_vm0 = vmor %vm413_vm15, %vm414_vm14  ;;  %vm501_vm2 = vweird.f32 %v494_v21 }
 0x253   :  { %v263_v23 = vmul.f32 %v587_v14, %v262_v37  ;;  %v409_v24 = vmul.f32 %v589_v22, %v408_v19 }
 0x254   :  { %v420_v38 = vpop.permute.xlu0 %419 }
 0x255   :  { %v410_v25 = vmul.f32 0.5, %v409_v24  ;;  %v267_v26 = vsel %vm266_vm13, %v587_v14, %v263_v23 }
 0x256   :  { %v268_v31 = vmul.f32 %v267_v26, %v256_v34 }
 0x257   :  { %v591_v27 = vpop.eup %590  ;;  %v411_v29 = vsub.f32 1.5, %v410_v25 }
 0x258   :  { %v496_v30 = vmul.f32 %v591_v27, %v494_v21  ;;  %v270_v44 = vmul.f32 %v269_v57, %v268_v31  ;;  %vm502_vm1 = vweird.f32 %v591_v27  ;;  %v429_v57 = vperm.slane %v126_v55, 1 }
 0x259   :  { %v412_v32 = vmul.f32 %v589_v22, %v411_v29  ;;  %vm503_vm3 = vmor %vm501_vm2, %vm502_vm1 }
 0x25a   :  { %v497_v36 = vmul.f32 %v591_v27, %v496_v30  ;;  %v272_v45 = vadd.f32 %v271_v58, %v270_v44  ;;  %v517_v58 = vperm.slane %v126_v55, 3 }
 0x25b   :  { %v416_v40 = vsel %vm415_vm0, %v589_v22, %v412_v32 }
 0x25c   :  { %v498_v41 = vmul.f32 0.5, %v497_v36  ;;  %v417_v39 = vmul.f32 %v416_v40, %v405_v35  ;;  %v273_v62 = vmax.f32 %v272_v45, 0.0 }
 0x25e   :  { %v499_v46 = vsub.f32 1.5, %v498_v41  ;;  %v422_v47 = vmul.f32 %v420_v38, %v417_v39  ;;  %v275_v3 = vmul.f32 %v274_v63, %v273_v62 }
 0x260   :  { %v500_v51 = vmul.f32 %v591_v27, %v499_v46  ;;  %v427_v48 = vadd.f32 %v425_v43, %v422_v47 }
 0x262   :  { %v504_v54 = vsel %vm503_vm3, %v591_v27, %v500_v51  ;;  %v428_v60 = vmax.f32 %v427_v48, 0.0 }
 0x263   :  { %v505_v59 = vmul.f32 %v504_v54, %v493_v52 }
 0x264   :  { %v430_v0 = vmul.f32 %v429_v57, %v428_v60 }
 0x265   :  { %v507_v61 = vmul.f32 %v506_v50, %v505_v59 }
 0x266   :  { %v431_v53 = vadd.f32 %v430_v0, %v275_v3 }
 0x267   :  { %v509_v1 = vadd.f32 %v508_v56, %v507_v61 }
 0x269   :  { %v510_v4 = vmax.f32 %v509_v1, 0.0 }
 0x26b   :  { %v512_v5 = vmul.f32 %v511_v2, %v510_v4 }
 0x26d   :  { %v513_v6 = vadd.f32 %v512_v5, %v431_v53 }
 0x26f   :  { %v514_v49 = vsel %vm243_vm10, %v513_v6, 0.0 }
 0x270   :  { %515 = vadd.xlane.f32.xlu1 %v514_v49 }
 0x2e3   :  { %v516_v42 = vpop.xlane.xlu1 %515 }
 0x2e4   :  { %v518_v7 = vadd.f32 %v517_v58, %v516_v42 }
 0x2e6   :  { %520 = vst.msk [vmem:[%s852_s4] sm:$0xff] %vm519_vm4, %v518_v7 }
 0x2e7   :  { %525 = vsyncpa [#allocation3], 1 }
 0x2e8   :  { %526 = vsyncpa [#allocation5], 1 }
 0x2e9   :  { %527 = vsyncpa [#allocation8], 1 }

</bundles_post_ra>
